<compile_context>
chip_gen: v5e
topology: v5e:2x2
jax: 0.10.0
libtpu: 0.0.40
codegen_flags: <defaults>
</compile_context>

<pallas_src>
import functools
import math

import jax
import jax.numpy as jnp
from jax.experimental import pallas as pl
from jax.experimental.pallas import tpu as pltpu


def _t2v_cos_kernel(tau_ref, w_ref, b_ref, o_ref, *, out_features):
    # tau_ref: (TILE, R*F)  w_ref: (R*F, R*O)  b_ref: (1, R*O)  o_ref: (TILE, R*O)
    tau = tau_ref[...].astype(jnp.float32)          # I/O may be bf16; compute f32
    y = jnp.dot(tau, w_ref[...], preferred_element_type=jnp.float32)
    y = y + b_ref[...]                               # broadcast bias over rows
    ro = y.shape[-1]
    col = jax.lax.broadcasted_iota(jnp.int32, (1, ro), 1)
    use_cos = (col % out_features) < (out_features - 1)   # static O; VPU-only, free
    o_ref[...] = jnp.where(use_cos, jnp.cos(y), y).astype(o_ref.dtype)


# Max packed rows per grid step (amortizes per-step overhead; see VMEM sizing below).
_MAX_TILE_PACKED = 8192
# Keep at least this many grid steps when the batch is large (v7x megacore balance).
_MIN_GRID_STEPS = 4
# Resident block-diagonal weight budget (f32 bytes) before falling back to R=1.
_MAX_WBD_BYTES = 2 << 20


def _pick_tile(pb):
    """Packed-row tile: large (overhead amortization) but >= _MIN_GRID_STEPS steps."""
    if pb <= 8:
        return pb                                   # single step, full-extent block
    tile = ((pl.cdiv(pb, _MIN_GRID_STEPS) + 7) // 8) * 8
    tile = min(tile, _MAX_TILE_PACKED)
    tile = min(tile, ((pb + 7) // 8) * 8)
    return max(8, tile)


def cosine_activation(tau, w, b, w0, b0, io_dtype=jnp.float32):
    """Pallas implementation of CosineActivation.forward.

    tau: [..., in_features]
    w:   [in_features, out_features - 1],  b: [out_features - 1]
    w0:  [in_features, 1],                 b0: [1]
    io_dtype: dtype for the streamed tau / output (bf16 recommended on v5e/v6e);
              all in-kernel arithmetic stays float32.
    returns: [..., out_features] in io_dtype
    """
    in_features = tau.shape[-1]
    out_features = w.shape[1] + 1
    lead_shape = tau.shape[:-1]

    tau2d = tau.reshape((-1, in_features)).astype(io_dtype)
    batch = tau2d.shape[0]

    # Fused weights / bias (kept f32, resident in VMEM).
    W = jnp.concatenate([w, w0], axis=-1).astype(jnp.float32)     # (F, O)
    Bv = jnp.concatenate([b, b0], axis=-1).astype(jnp.float32)    # (O,)

    # Row-packing factor R so the output last dim R*O is a multiple of 128,
    # bounded by the resident weight footprint (fixes odd-O / large-F blowups).
    R = 128 // math.gcd(out_features, 128)
    RF, RO = R * in_features, R * out_features
    if (RF * RO * 4 > _MAX_WBD_BYTES) or RO > 4096 or RF > 4096:
        R = 1
        RF, RO = in_features, out_features

    # Block-diagonal weight via a single kron (no Python .at[].set() loop).
    Wbd = jnp.kron(jnp.eye(R, dtype=jnp.float32), W)              # (R*F, R*O)
    Bbd = jnp.tile(Bv, R)[None, :]                                # (1, R*O)

    # Pad only to a multiple of R (<= R-1 rows); partial grid tiles handled by Pallas.
    pb = pl.cdiv(batch, R)
    pad_rows = pb * R - batch
    if pad_rows:
        tau2d = jnp.pad(tau2d, ((0, pad_rows), (0, 0)))
    tau_packed = tau2d.reshape(pb, RF)                            # free (row-major)

    tile = _pick_tile(pb)
    grid = (pl.cdiv(pb, tile),)

    # VMEM budget: tau block is lane-padded to 128, everything double-buffered.
    io_itemsize = jnp.dtype(io_dtype).itemsize
    lane = 128
    vmem_est = (2 * tile * max(RF, lane) * io_itemsize            # streamed tau
                + 2 * tile * max(RO, lane) * io_itemsize          # streamed output
                + 2 * (RF + 2) * max(RO, lane) * 4)               # resident W, B
    vmem_limit = int(min(64 << 20, max(32 << 20, 2 * vmem_est)))

    cost = pl.CostEstimate(
        flops=2 * pb * RF * RO,                                   # R-inflated MACs
        transcendentals=pb * (RO - R),
        bytes_accessed=(tau_packed.size * io_itemsize + Wbd.size * 4
                        + Bbd.size * 4 + pb * RO * io_itemsize),
    )

    kernel = functools.partial(_t2v_cos_kernel, out_features=out_features)

    out_packed = pl.pallas_call(
        kernel,
        out_shape=jax.ShapeDtypeStruct((pb, RO), io_dtype),
        grid_spec=pl.GridSpec(
            grid=grid,
            in_specs=[
                pl.BlockSpec((tile, RF), lambda i: (i, 0)),       # streamed tau
                pl.BlockSpec((RF, RO), lambda i: (0, 0)),         # resident weights
                pl.BlockSpec((1, RO), lambda i: (0, 0)),          # resident bias
            ],
            out_specs=pl.BlockSpec((tile, RO), lambda i: (i, 0)),
        ),
        compiler_params=pltpu.CompilerParams(
            dimension_semantics=("parallel",),
            vmem_limit_bytes=vmem_limit,
        ),
        cost_estimate=cost,
    )(tau_packed, Wbd, Bbd)

    out = out_packed.reshape(pb * R, out_features)
    if pad_rows:
        out = out[:batch]
    return out.reshape(lead_shape + (out_features,))


def reference(tau, w, b, w0, b0):
    v1 = jnp.cos(jnp.matmul(tau, w) + b)
    v2 = jnp.matmul(tau, w0) + b0
    return jnp.concatenate([v1, v2], axis=-1)


if __name__ == "__main__":
    in_features = 4
    out_features = 32

    key = jax.random.PRNGKey(0)
    k_tau, k_tau2, k_tau3, k_w0, k_b0, k_w, k_b = jax.random.split(key, 7)

    # Deterministic "randn" parameter init, matching torch shapes.
    w0 = jax.random.normal(k_w0, (in_features, 1), dtype=jnp.float32)
    b0 = jax.random.normal(k_b0, (1,), dtype=jnp.float32)
    w = jax.random.normal(k_w, (in_features, out_features - 1), dtype=jnp.float32)
    b = jax.random.normal(k_b, (out_features - 1,), dtype=jnp.float32)

    # Case 1: simple 2-D batch, f32 I/O (exact path).
    tau = jax.random.normal(k_tau, (8, in_features), dtype=jnp.float32)
    out = jax.block_until_ready(cosine_activation(tau, w, b, w0, b0))
    ref = reference(tau, w, b, w0, b0)
    assert out.shape == (8, out_features), out.shape
    assert jnp.allclose(out, ref, atol=1e-5, rtol=1e-5), float(
        jnp.max(jnp.abs(out - ref)))

    # Case 2: leading dims + batch not divisible by the packing factor
    # (exercises the minimal R-pad and the reshape-back/slice path).
    tau3 = jax.random.normal(k_tau2, (2, 5, in_features), dtype=jnp.float32)
    out3 = jax.block_until_ready(cosine_activation(tau3, w, b, w0, b0))
    ref3 = reference(tau3, w, b, w0, b0)
    assert out3.shape == (2, 5, out_features), out3.shape
    assert jnp.allclose(out3, ref3, atol=1e-5, rtol=1e-5), float(
        jnp.max(jnp.abs(out3 - ref3)))

    # Case 3: larger batch -> multi-step grid with a partial last tile.
    taub = jax.random.normal(k_tau3, (100, in_features), dtype=jnp.float32)
    outb = jax.block_until_ready(cosine_activation(taub, w, b, w0, b0))
    refb = reference(taub, w, b, w0, b0)
    assert outb.shape == (100, out_features), outb.shape
    assert jnp.allclose(outb, refb, atol=1e-5, rtol=1e-5), float(
        jnp.max(jnp.abs(outb - refb)))

    # Case 4: bf16 I/O path (the v5e/v6e HBM-bound perf mode); compute stays f32.
    outb16 = jax.block_until_ready(
        cosine_activation(taub, w, b, w0, b0, io_dtype=jnp.bfloat16))
    assert outb16.dtype == jnp.bfloat16
    assert jnp.allclose(outb16.astype(jnp.float32), refb, atol=5e-2, rtol=5e-2), float(
        jnp.max(jnp.abs(outb16.astype(jnp.float32) - refb)))

    print("KERNEL_OK")
</pallas_src>

<mosaic_0001>
module attributes {stable_mosaic.version = 11 : i64} {
  func.func @_t2v_cos_kernel(%arg0: i32, %arg1: memref<2x16xf32, #tpu.memory_space<vmem>>, %arg2: memref<16x128xf32, #tpu.memory_space<vmem>>, %arg3: memref<1x128xf32, #tpu.memory_space<vmem>>, %arg4: memref<2x128xf32, #tpu.memory_space<vmem>>) attributes {dimension_semantics = [#tpu.dimension_semantics<parallel>], iteration_bounds = array<i64: 1>, scalar_prefetch = 0 : i64, scratch_operands = 0 : i64, tpu.core_type = #tpu.core_type<tc>, window_params = [{transform_indices = @transform_0, window_bounds = array<i64: 2, 16>}, {pipeline_mode = #tpu.pipeline_mode<synchronous>, transform_indices = @transform_1, window_bounds = array<i64: 16, 128>}, {pipeline_mode = #tpu.pipeline_mode<synchronous>, transform_indices = @transform_2, window_bounds = array<i64: 1, 128>}, {transform_indices = @transform_3, window_bounds = array<i64: 2, 128>}]} {
    %c0 = arith.constant 0 : index
    %c0_0 = arith.constant 0 : index
    %0 = vector.load %arg1[%c0, %c0_0] : memref<2x16xf32, #tpu.memory_space<vmem>>, vector<2x16xf32>
    %c0_1 = arith.constant 0 : index
    %c0_2 = arith.constant 0 : index
    %1 = vector.load %arg2[%c0_1, %c0_2] : memref<16x128xf32, #tpu.memory_space<vmem>>, vector<16x128xf32>
    %cst = arith.constant dense<0.000000e+00> : vector<2x128xf32>
    %2 = tpu.matmul %0, %1, %cst {dimension_numbers = #tpu.dot_dimension_numbers<[1], [0], [0], [1], [0, 0, 1, 1], [], []>} : vector<2x16xf32>, vector<16x128xf32>, vector<2x128xf32> -> vector<2x128xf32>
    %c0_3 = arith.constant 0 : index
    %c0_4 = arith.constant 0 : index
    %3 = vector.load %arg3[%c0_3, %c0_4] : memref<1x128xf32, #tpu.memory_space<vmem>>, vector<1x128xf32>
    %4 = vector.broadcast %3 : vector<1x128xf32> to vector<2x128xf32>
    %5 = arith.addf %2, %4 : vector<2x128xf32>
    %6 = tpu.iota {dimensions = array<i32: 1>} : vector<1x128xi32>
    %c32_i32 = arith.constant 32 : i32
    %c0_i32 = arith.constant 0 : i32
    %7 = arith.cmpi eq, %c32_i32, %c0_i32 : i32
    %c1_i32 = arith.constant 1 : i32
    %8 = arith.select %7, %c1_i32, %c32_i32 : i32
    %9 = vector.broadcast %8 : i32 to vector<1x128xi32>
    %10 = arith.remsi %6, %9 : vector<1x128xi32>
    %c0_i32_5 = arith.constant 0 : i32
    %11 = vector.broadcast %c0_i32_5 : i32 to vector<1x128xi32>
    %12 = arith.cmpi ne, %10, %11 : vector<1x128xi32>
    %c0_i32_6 = arith.constant 0 : i32
    %13 = vector.broadcast %c0_i32_6 : i32 to vector<1x128xi32>
    %14 = arith.cmpi slt, %10, %13 : vector<1x128xi32>
    %c0_i32_7 = arith.constant 0 : i32
    %15 = arith.cmpi slt, %8, %c0_i32_7 : i32
    %16 = vector.broadcast %15 : i1 to vector<1x128xi1>
    %17 = vector.broadcast %16 : vector<1x128xi1> to vector<1x128xi1>
    %18 = arith.xori %14, %17 : vector<1x128xi1>
    %19 = arith.andi %18, %12 : vector<1x128xi1>
    %20 = vector.broadcast %8 : i32 to vector<1x128xi32>
    %21 = arith.addi %10, %20 : vector<1x128xi32>
    %22 = arith.select %19, %21, %10 : vector<1x128xi1>, vector<1x128xi32>
    %c31_i32 = arith.constant 31 : i32
    %23 = vector.broadcast %c31_i32 : i32 to vector<1x128xi32>
    %24 = arith.cmpi slt, %22, %23 : vector<1x128xi32>
    %25 = math.cos %5 : vector<2x128xf32>
    %26 = vector.shape_cast %24 : vector<1x128xi1> to vector<1x128xi1>
    %27 = vector.broadcast %26 : vector<1x128xi1> to vector<2x128xi1>
    %28 = arith.select %27, %25, %5 : vector<2x128xi1>, vector<2x128xf32>
    %c0_8 = arith.constant 0 : index
    %c0_9 = arith.constant 0 : index
    %29 = vector.load %arg4[%c0_8, %c0_9] : memref<2x128xf32, #tpu.memory_space<vmem>>, vector<2x128xf32>
    tpu.vector_store %arg4[%c0_8, %c0_9], %28 {strides = array<i32>} : memref<2x128xf32, #tpu.memory_space<vmem>>, vector<2x128xf32>,
    return
  }
  func.func @transform_0(%arg0: i32) -> (i32, i32) {
    %c0_i32 = arith.constant 0 : i32
    %c0_i32_0 = arith.constant 0 : i32
    return %arg0, %c0_i32 : i32, i32
  }
  func.func @transform_1(%arg0: i32) -> (i32, i32) {
    %c0_i32 = arith.constant 0 : i32
    %c0_i32_0 = arith.constant 0 : i32
    %c0_i32_1 = arith.constant 0 : i32
    return %c0_i32, %c0_i32_0 : i32, i32
  }
  func.func @transform_2(%arg0: i32) -> (i32, i32) {
    %c0_i32 = arith.constant 0 : i32
    %c0_i32_0 = arith.constant 0 : i32
    %c0_i32_1 = arith.constant 0 : i32
    return %c0_i32, %c0_i32_0 : i32, i32
  }
  func.func @transform_3(%arg0: i32) -> (i32, i32) {
    %c0_i32 = arith.constant 0 : i32
    %c0_i32_0 = arith.constant 0 : i32
    return %arg0, %c0_i32 : i32, i32
  }
}

</mosaic_0001>

<bundles_post_ra>
// kernel: tpu_custom_call.1
= control target key start
LH: loop header
LB: loop body
LE: loop exit
PB: predicated region body
PF: predicated region fallthrough
CT: control target
= control target key end

     0   :  { %8 = vsyncpa [#allocation3], 0  ;;  %s469_s0 = inlined_call_operand.hbm [shape: f32[2,16], index: 0, kind: input, shape index: {}]   ;;  %s470_s1 = inlined_call_operand.hbm [shape: f32[16,128], index: 1, kind: input, shape index: {}]   ;;  %s471_s2 = inlined_call_operand.vmem [shape: f32[1,128], index: 2, kind: input, shape index: {}]   ;;  %s472_s3 = inlined_call_operand.hbm [shape: f32[2,128], index: 3, kind: output, shape index: {}]  }
   0x1   :  { %9 = vsyncpa [#allocation6], 0 }
   0x2   :  { %10 = vsyncpa [#allocation4], 0  ;;  %s16_s14 = sshll.u32 %s469_s0, 4  ;;  %s362_s15 = smov [#allocation2]   ;;  %s17_s14 = int_to_ptr.hbm [resolvable:$true] %s16_s14 }
   0x3   :  { %s18_s16 = sshll.u32 %s362_s15, 4  ;;  %s26_s19 = sshll.u32 %s470_s1, 4  ;;  %s19_s16 = int_to_ptr.vmem [resolvable:$true] %s18_s16  ;;  %s27_s19 = int_to_ptr.hbm [resolvable:$true] %s26_s19 }
   0x4   :  { %21 = dma.hbm_to_vmem [thread:$0]  %s17_s14, 32, %s19_s16, [#allocation3]  }
   0x5   :  { %s363_s20 = smov [#allocation5]   ;;  %s364_s22 = smov 128  }
   0x6   :  { %s28_s21 = sshll.u32 %s363_s20, 4  ;;  %s365_s23 = smov 8   ;;  %s29_s21 = int_to_ptr.vmem [resolvable:$true] %s28_s21 }
   0x7   :  { %34 = dma.hbm_to_vmem [thread:$0]  %s27_s19, 256, %s29_s21, [#allocation6], %s364_s22, %s364_s22, %s365_s23  }
   0x8   :  { %356 = dma.done.wait [#allocation3], 32  }
   0x9   :  { %357 = vsyncadd [#allocation3], 4294967264 }
   0xa   :  { %358 = dma.done.wait [#allocation6], 256  }
   0xb   :  { %359 = vsyncadd [#allocation6], 4294967040  ;;  %v47_v0 = vld [vmem:[#allocation5 + $0x8] sm:$0xff]  ;;  %v46_v1 = vld [vmem:[#allocation5] sm:$0xff]  ;;  %vm52_vm0 = vcmask 130048   ;;  %s256_s27 = sshll.u32 %s472_s3, 4  ;;  %s257_s27 = int_to_ptr.hbm [resolvable:$true] %s256_s27 }
   0xc   :  { %70 = vmatpush.msra.mxu0 %v47_v0  ;;  %v45_v2 = vld [vmem:[#allocation2] sm:$0x3]  ;;  %v366_v17 = vmov 2102212464   ;;  %v367_v19 = vmov 920167782  }
   0xd   :  { %v283_v3 = vld [vmem:[%s471_s2] ss:$0 sm:$0xff]  ;;  %v368_v22 = vmov 1326507024   ;;  %v369_v24 = vmov 683565275  }
   0xe   :  { %71 = vmatpush.msra.mxu0 %v46_v1  ;;  %v370_v26 = vmov 2475754826   ;;  %v371_v29 = vmov 2131351028   ;;  %s373_s2 = smov [#allocation7]  }
   0xf   :  { %267 = vmatmul.msk.f32.vlgmr.msra.gmra.mxu0 %vm52_vm0, %v45_v2  ;;  %s254_s24 = sshll.u32 %s373_s2, 4  ;;  %s255_s24 = int_to_ptr.vmem [resolvable:$true] %s254_s24 }
  0x8c   :  { %v73_v4 = vpop.f32.mrf.mxu0 }
  0x8d   :  { %v403_v5 = vadd.f32 %v283_v3, %v73_v4  ;;  %v372_v3 = vmov 0  }
  0x8f   :  { %v94_v6 = vand.u32 2139095040, %v403_v5  ;;  %v91_v9 = vand.u32 2147483647, %v403_v5  ;;  %vm93_vm13 = vcmp.lt.s32.totalorder %v403_v5, 0 }
  0x91   :  { %v95_v7 = vshrl.u32 %v94_v6, 23  ;;  %v98_v11 = vand.u32 8388607, %v91_v9  ;;  %vm455_vm14 = vcmp.le.f32.partialorder %v91_v9, 0.7853982 }
  0x93   :  { %v268_v8 = vadd.s32 4294967169, %v95_v7  ;;  %v99_v15 = vor.u32 8388608, %v98_v11 }
  0x95   :  { %v101_v10 = vadd.s32 1, %v268_v8  ;;  %v418_v36 = vshll.u32 %v99_v15, 8 }
  0x97   :  { %vm102_vm1 = vcmp.gt.s32.totalorder %v101_v10, 0  ;;  %v140_v46 = vand.u32 65535, %v418_v36  ;;  %v141_v48 = vshrl.u32 %v418_v36, 16 }
  0x98   :  { %v103_v12 = vsel %vm102_vm1, %v101_v10, 0 }
  0x99   :  { %v105_v13 = vand.u32 31, %v103_v12  ;;  %v411_v16 = vshrl.u32 %v103_v12, 5 }
  0x9b   :  { %v409_v14 = vsub.s32 32, %v105_v13  ;;  %v117_v18 = vshll.u32 %v366_v17, %v105_v13  ;;  %v120_v20 = vshll.u32 %v367_v19, %v105_v13  ;;  %v108_v25 = vshll.u32 %v369_v24, %v105_v13 }
  0x9c   :  { %v111_v28 = vshll.u32 %v370_v26, %v105_v13  ;;  %v114_v31 = vshll.u32 %v371_v29, %v105_v13  ;;  %vm126_vm2 = vcmp.lt.s32.totalorder %v411_v16, 4  ;;  %vm123_vm3 = vcmp.lt.s32.totalorder %v411_v16, 1 }
  0x9d   :  { %v118_v21 = vshrl.u32 %v367_v19, %v409_v14  ;;  %v121_v23 = vshrl.u32 %v368_v22, %v409_v14  ;;  %v109_v27 = vshrl.u32 %v370_v26, %v409_v14  ;;  %v112_v30 = vshrl.u32 %v371_v29, %v409_v14 }
  0x9e   :  { %v115_v32 = vshrl.u32 %v366_v17, %v409_v14  ;;  %vm125_vm4 = vcmp.lt.s32.totalorder %v411_v16, 3  ;;  %vm124_vm5 = vcmp.lt.s32.totalorder %v411_v16, 2  ;;  %v107_v10 = vshrl.u32 %v369_v24, %v409_v14 }
  0x9f   :  { %v119_v33 = vor.u32 %v118_v21, %v117_v18  ;;  %v122_v34 = vor.u32 %v121_v23, %v120_v20  ;;  %v110_v35 = vor.u32 %v109_v27, %v108_v25  ;;  %v113_v37 = vor.u32 %v112_v30, %v111_v28 }
  0xa0   :  { %v116_v38 = vor.u32 %v115_v32, %v114_v31 }
  0xa1   :  { %v132_v39 = vsel %vm126_vm2, %v119_v33, 920167782  ;;  %v136_v40 = vsel %vm126_vm2, %v122_v34, 1326507024  ;;  %v131_v41 = vsel %vm123_vm3, %v110_v35, %v113_v37  ;;  %v127_v18 = vsel %vm123_vm3, %v107_v10, %v110_v35 }
  0xa2   :  { %v133_v42 = vsel %vm125_vm4, %v116_v38, %v132_v39  ;;  %v135_v43 = vsel %vm123_vm3, %v113_v37, %v116_v38  ;;  %v137_v45 = vsel %vm125_vm4, %v119_v33, %v136_v40  ;;  %v128_v6 = vsel %vm126_vm2, %v116_v38, 2102212464 }
  0xa3   :  { %v134_v44 = vsel %vm124_vm5, %v131_v41, %v133_v42  ;;  %v138_v47 = vsel %vm124_vm5, %v135_v43, %v137_v45  ;;  %v129_v19 = vsel %vm125_vm4, %v113_v37, %v128_v6  ;;  %vm234_vm3 = vweird.f32 %v403_v5 }
  0xa4   :  { %v164_v49 = vand.u32 65535, %v134_v44  ;;  %v165_v50 = vshrl.u32 %v134_v44, 16  ;;  %v142_v51 = vand.u32 65535, %v138_v47  ;;  %v143_v52 = vshrl.u32 %v138_v47, 16 }
  0xa5   :  { %v130_v14 = vsel %vm124_vm5, %v127_v18, %v129_v19 }
  0xa6   :  { %v167_v53 = vmul.u32 %v165_v50, %v140_v46  ;;  %v168_v54 = vmul.u32 %v164_v49, %v141_v48  ;;  %v145_v55 = vmul.u32 %v143_v52, %v140_v46  ;;  %v146_v56 = vmul.u32 %v142_v51, %v141_v48 }
  0xa7   :  { %v166_v57 = vmul.u32 %v164_v49, %v140_v46  ;;  %v144_v59 = vmul.u32 %v142_v51, %v140_v46  ;;  %v169_v61 = vmul.u32 %v165_v50, %v141_v48  ;;  %v147_v62 = vmul.u32 %v143_v52, %v141_v48 }
  0xa8   :  { %v170_v58 = vshll.u32 %v167_v53, 16  ;;  %v148_v60 = vshll.u32 %v145_v55, 16  ;;  %v172_v63 = vshll.u32 %v168_v54, 16  ;;  %v150_v1 = vshll.u32 %v146_v56, 16 }
  0xa9   :  { %v171_v15 = vshrl.u32 %v167_v53, 16  ;;  %v149_v20 = vshrl.u32 %v145_v55, 16  ;;  %v173_v22 = vshrl.u32 %v168_v54, 16  ;;  %v151_v25 = vshrl.u32 %v146_v56, 16 }
  0xaa   :  { %vm174_vm6 = vc.u32 %v166_v57, %v170_v58  ;;  %v176_v0 = vadd.s32 %v170_v58, %v166_v57  ;;  %vm152_vm7 = vc.u32 %v144_v59, %v148_v60  ;;  %v154_v2 = vadd.s32 %v148_v60, %v144_v59 }
  0xab   :  { %v175_v4 = vsel %vm174_vm6, 1, %v372_v3  ;;  %v153_v7 = vsel %vm152_vm7, 1, %v372_v3  ;;  %v184_v30 = vmul.u32 %v418_v36, %v130_v14 }
  0xac   :  { %v177_v8 = vadd.s32 %v175_v4, %v169_v61  ;;  %vm178_vm8 = vc.u32 %v176_v0, %v172_v63  ;;  %v155_v11 = vadd.s32 %v153_v7, %v147_v62  ;;  %vm156_vm9 = vc.u32 %v154_v2, %v150_v1 }
  0xad   :  { %v179_v12 = vsel %vm178_vm8, 1, %v372_v3  ;;  %v157_v13 = vsel %vm156_vm9, 1, %v372_v3  ;;  %v180_v28 = vadd.s32 %v176_v0, %v172_v63  ;;  %v76_v63 = vlaneseq }
  0xae   :  { %v181_v17 = vadd.s32 %v179_v12, %v177_v8  ;;  %v159_v21 = vadd.s32 %v157_v13, %v155_v11 }
  0xaf   :  { %v77_v4 = vand.u32 127, %v76_v63 }
  0xb0   :  { %v182_v23 = vadd.s32 %v181_v17, %v171_v15  ;;  %v160_v26 = vadd.s32 %v159_v21, %v149_v20 }
  0xb1   :  { %v82_v13 = vand.u32 31, %v77_v4 }
  0xb2   :  { %v183_v24 = vadd.s32 %v182_v23, %v173_v22  ;;  %v161_v27 = vadd.s32 %v160_v26, %v151_v25 }
  0xb3   :  { %vm90_vm1 = vcmp.lt.s32.totalorder %v82_v13, 31 }
  0xb4   :  { %v187_v29 = vadd.s32 1, %v183_v24  ;;  %vm186_vm10 = vc.u32 %v161_v27, %v180_v28  ;;  %v185_v42 = vadd.s32 %v180_v28, %v161_v27 }
  0xb6   :  { %v188_v31 = vsel %vm186_vm10, %v187_v29, %v183_v24 }
  0xb7   :  { %v189_v32 = vadd.s32 %v188_v31, %v184_v30 }
  0xb9   :  { %v190_v33 = vadd.s32 536870912, %v189_v32 }
  0xbb   :  { %v191_v34 = vshrl.u32 %v190_v33, 30 }
  0xbd   :  { %v192_v35 = vshll.u32 %v191_v34, 30  ;;  %v215_v60 = vsub.s32 4, %v191_v34 }
  0xbf   :  { %v193_v37 = vsub.s32 %v189_v32, %v192_v35  ;;  %v216_v2 = vsel %vm93_vm13, %v215_v60, %v191_v34 }
  0xc0   :  { %v218_v6 = vsel %vm455_vm14, 0, %v216_v2 }
  0xc1   :  { %vm194_vm11 = vcmp.lt.s32.totalorder %v193_v37, 0  ;;  %v195_v38 = vsub.s32 0, %v193_v37  ;;  %v235_v12 = vand.u32 3, %v218_v6 }
  0xc3   :  { %v196_v39 = vsel %vm194_vm11, %v195_v38, %v193_v37  ;;  %vm237_vm15 = vcmp.eq.s32.totalorder %v235_v12, 0  ;;  %vm240_vm0 = vcmp.eq.s32.totalorder %v235_v12, 2  ;;  %vm236_vm2 = vcmp.lt.s32.totalorder %v235_v12, 2 }
  0xc4   :  { %v197_v40 = vclz %v196_v39 }
  0xc6   :  { %v269_v41 = vadd.s32 4294967294, %v197_v40 }
  0xc8   :  { %vm270_vm12 = vcmp.lt.s32.totalorder %v269_v41, 0 }
  0xc9   :  { %v200_v16 = vsel %vm270_vm12, 0, %v269_v41 }
  0xca   :  { %v201_v43 = vsub.s32 32, %v200_v16  ;;  %v205_v44 = vsub.s32 4294967266, %v200_v16  ;;  %v202_v45 = vshll.u32 %v193_v37, %v200_v16 }
  0xcc   :  { %v203_v46 = vshrl.u32 %v185_v42, %v201_v43  ;;  %v206_v36 = vadd.s32 127, %v205_v44 }
  0xce   :  { %v204_v47 = vor.u32 %v203_v46, %v202_v45  ;;  %v207_v48 = vshll.u32 %v206_v36, 23 }
  0xd0   :  { %v208_v49 = vor.u32 4788187, %v207_v48  ;;  %v211_v51 = vcvt.s32.f32 %v204_v47 }
  0xd2   :  { %v209_v50 = vand.u32 2147483647, %v208_v49 }
  0xd4   :  { %v212_v52 = vmul.f32 %v211_v51, %v209_v50 }
  0xd6   :  { %v213_v53 = vxor.u32 2147483648, %v212_v52 }
  0xd8   :  { %v214_v55 = vsel %vm93_vm13, %v213_v53, %v212_v52 }
  0xd9   :  { %v217_v56 = vsel %vm455_vm14, %v403_v5, %v214_v55 }
  0xda   :  { %v219_v57 = vmul.f32 %v217_v56, %v217_v56 }
  0xdc   :  { %v220_v58 = vmul.f32 -0.001358992, %v219_v57  ;;  %v227_v59 = vmul.f32 -0.00019511016, %v219_v57 }
  0xde   :  { %v221_v61 = vadd.f32 0.041655596, %v220_v58  ;;  %v228_v62 = vadd.f32 0.008332121, %v227_v59 }
  0xe0   :  { %v222_v0 = vmul.f32 %v221_v61, %v219_v57  ;;  %v229_v1 = vmul.f32 %v228_v62, %v219_v57 }
  0xe2   :  { %v223_v3 = vadd.f32 -0.4999988, %v222_v0  ;;  %v230_v9 = vadd.f32 -0.16666654, %v229_v1 }
  0xe4   :  { %v224_v7 = vmul.f32 %v223_v3, %v219_v57  ;;  %v231_v8 = vmul.f32 %v230_v9, %v219_v57 }
  0xe6   :  { %v225_v10 = vadd.f32 1.0, %v224_v7  ;;  %v232_v11 = vadd.f32 1.0, %v231_v8 }
  0xe8   :  { %v233_v15 = vmul.f32 %v232_v11, %v217_v56  ;;  %v241_v17 = vxor.u32 2147483648, %v225_v10 }
  0xea   :  { %v238_v18 = vxor.u32 2147483648, %v233_v15  ;;  %v242_v20 = vsel %vm240_vm0, %v241_v17, %v233_v15 }
  0xec   :  { %v239_v19 = vsel %vm237_vm15, %v225_v10, %v238_v18 }
  0xed   :  { %v243_v21 = vsel %vm236_vm2, %v239_v19, %v242_v20 }
  0xee   :  { %v244_v22 = vsel %vm234_vm3, nan, %v243_v21 }
  0xef   :  { %v247_v23 = vsel %vm90_vm1, %v244_v22, %v403_v5 }
  0xf0   :  { %248 = vst [vmem:[#allocation7] sm:$0x3] %v247_v23 }
  0xf1   :  { %259 = dma.vmem_to_hbm [thread:$0]  %s255_s24, 32, %s257_s27, [#allocation4]  }
  0xf2   :  { %360 = dma.done.wait [#allocation4], 32  }
  0xf3   :  { %361 = vsyncadd [#allocation4], 4294967264 }
  0xf4   :  { %264 = vsyncpa [#allocation3], 1 }
  0xf5   :  { %265 = vsyncpa [#allocation6], 1 }
  0xf6   :  { %266 = vsyncpa [#allocation4], 1 }

</bundles_post_ra>
